<compile_context>
chip_gen: v5e
topology: v5e:2x2
jax: 0.10.0
libtpu: 0.0.40
codegen_flags: <defaults>
</compile_context>

<pallas_src>
import functools

import jax
import jax.numpy as jnp
import numpy as np
from jax import lax
from jax.experimental import pallas as pl
from jax.experimental.pallas import tpu as pltpu

TILE_A_MAX = 512     # rows of cloud A per grid step (multiple of 8)
TILE_B_MAX = 2048    # columns of cloud B per grid step (multiple of 128)


def _round_up(x, m):
    return ((x + m - 1) // m) * m


def _energy_kernel(a_ref, b_ref, out_ref, *, inv_sigma2, dim, tile_a, tile_b):
    """Accumulate sum_ij K(||c^A_i - c^B_j||^2) * (n^A_i . n^B_j) for one
    (A-tile, B-tile) pair into the A-tile's lane-dense (8,128) partial-sum
    block, walking the pair grid in register-resident (8,128) micro-tiles.

    a_ref : (tile_a, 2*dim)  columns [0:dim]=normals, [dim:2*dim]=centers
    b_ref : (2*dim, tile_b)  rows    [0:dim]=normals^T, [dim:2*dim]=centers^T
    """
    j = pl.program_id(1)

    @pl.when(j == 0)
    def _():
        out_ref[...] = jnp.zeros_like(out_ref)

    n_chunks = tile_a // 8
    n_strips = tile_b // 128

    def chunk_body(ci, acc):
        row0 = pl.multiple_of(ci * 8, 8)
        a = a_ref[pl.ds(row0, 8), :]                       # (8, 2*dim)
        # Hoist the lane broadcasts of the A columns once per 8-row chunk and
        # reuse them across every B lane strip (JAX does not CSE broadcasts).
        an_b = [jnp.broadcast_to(a[:, c:c + 1], (8, 128)) for c in range(dim)]
        ac_b = [jnp.broadcast_to(a[:, dim + c:dim + c + 1], (8, 128))
                for c in range(dim)]

        # Statically unrolled strip loop: every temporary is one (8,128) vreg
        # and the partial sum accumulates straight into the carried `acc`.
        for si in range(n_strips):
            b = b_ref[:, si * 128:(si + 1) * 128]          # (2*dim, 128)
            d2 = jnp.zeros((8, 128), jnp.float32)
            nn = jnp.zeros((8, 128), jnp.float32)
            for c in range(dim):
                diff = ac_b[c] - b[dim + c:dim + c + 1, :]
                d2 = d2 + diff * diff
                nn = nn + an_b[c] * b[c:c + 1, :]
            # Cauchy kernel K(d^2) = 1 / (1 + d^2/sigma^2); divide on the EUP.
            k = pl.reciprocal(1.0 + d2 * inv_sigma2, approx=True)
            acc = acc + k * nn
        return acc

    acc = lax.fori_loop(0, n_chunks, chunk_body,
                        jnp.zeros((8, 128), jnp.float32))
    out_ref[...] += acc


def _merge_a(normals, centers):
    """(n, 2d) merged A-side input: [normals | centers]."""
    return jnp.concatenate([normals, centers], axis=1).astype(jnp.float32)


def _merge_b(normals, centers, normal_scale=1.0):
    """(2d, n) merged, lane-dense B-side input: [scale*normals^T ; centers^T]."""
    return jnp.concatenate([normal_scale * normals.T, centers.T],
                           axis=0).astype(jnp.float32)


def _merged_pair_energy(a_merged, b_merged, sigma, dim):
    """<A, B>_W = sum_ij K(||c^A_i - c^B_j||^2) (n^A_i . n^B_j), Cauchy kernel."""
    na = a_merged.shape[0]
    nb = b_merged.shape[1]

    na8 = _round_up(na, 8)
    # Guarantee >= 2 A blocks (when the cloud is big enough) so both of v7x's
    # TensorCores get work along the "parallel" A axis.
    if na8 >= 16:
        tile_a = min(TILE_A_MAX, _round_up((na8 + 1) // 2, 8))
    else:
        tile_a = na8
    na_pad = _round_up(na8, tile_a)
    num_a = na_pad // tile_a

    tile_b = min(TILE_B_MAX, _round_up(nb, 128))
    nb_pad = _round_up(nb, tile_b)
    num_b = nb_pad // tile_b

    # Padding rows/cols carry zero normals -> exactly zero energy contribution.
    a_pad = jnp.zeros((na_pad, 2 * dim), jnp.float32).at[:na].set(a_merged)
    b_pad = jnp.zeros((2 * dim, nb_pad), jnp.float32).at[:, :nb].set(b_merged)

    kern = functools.partial(_energy_kernel,
                             inv_sigma2=float(1.0 / (sigma * sigma)),
                             dim=dim, tile_a=tile_a, tile_b=tile_b)

    out = pl.pallas_call(
        kern,
        out_shape=jax.ShapeDtypeStruct((num_a, 8, 128), jnp.float32),
        grid_spec=pltpu.PrefetchScalarGridSpec(
            num_scalar_prefetch=0,
            grid=(num_a, num_b),
            in_specs=[
                pl.BlockSpec((tile_a, 2 * dim), lambda i, j: (i, 0)),   # A side
                pl.BlockSpec((2 * dim, tile_b), lambda i, j: (0, j)),   # B side
            ],
            # Per-A-tile lane-dense partial sums; constant over the B axis
            # (accumulator), varies over the "parallel" A axis (megacore OK).
            out_specs=pl.BlockSpec((None, 8, 128), lambda i, j: (i, 0, 0)),
        ),
        compiler_params=pltpu.CompilerParams(
            dimension_semantics=("parallel", "arbitrary"),
        ),
    )(a_pad, b_pad)

    # Single cross-lane reduce over the tiny (num_a, 8, 128) partial sums.
    return jnp.sum(out)


def _ref_pair_energy(an, ac, bn, bc, sigma):
    """Pure-JAX reference for validation."""
    d2 = jnp.sum((ac[:, None, :] - bc[None, :, :]) ** 2, axis=-1)
    k = 1.0 / (1.0 + d2 / (sigma * sigma))
    return jnp.sum(k * (an @ bn.T))


class SingleAngleCurrentsJax:
    """JAX/Pallas port of camp's SingleAngleCurrents (forward pass only)."""

    def __init__(self, tar_normals, tar_centers, sigma,
                 init_angle=0.0, init_translation=None, kernel='cauchy'):
        d = tar_centers.shape[1]
        self.angle = jnp.asarray(init_angle, jnp.float32)
        self.translation = (jnp.zeros((d,), jnp.float32) if init_translation is None
                            else jnp.asarray(init_translation, jnp.float32))
        self.tar_normals = jnp.asarray(tar_normals, jnp.float32)
        self.tar_centers = jnp.asarray(tar_centers, jnp.float32)
        self.sigma = float(sigma)
        self.dim = d
        # Static target half of the fused cross-term B cloud (transposed,
        # lane-dense, normals pre-scaled by -2): built once, reused each forward.
        self._tar_b_scaled = _merge_b(self.tar_normals, self.tar_centers, -2.0)
        # TODO(synk): CurrentsEnergy source not included in the reference module;
        # implementing the standard currents metric E = <S,S> - 2<S,T> + <T,T>
        # with a Cauchy kernel K(d^2) = 1/(1 + d^2/sigma^2); <T,T> precomputed.
        self.e_tar_tar = _merged_pair_energy(
            _merge_a(self.tar_normals, self.tar_centers),
            _merge_b(self.tar_normals, self.tar_centers, 1.0),
            self.sigma, d)

    def build_matrix(self):
        c = jnp.cos(self.angle)
        s = jnp.sin(self.angle)
        m = jnp.eye(self.dim, dtype=jnp.float32)
        m = m.at[0, 0].set(c).at[0, 1].set(-s).at[1, 0].set(s).at[1, 1].set(c)
        return m

    def _transform(self, src_normals, src_centers):
        affine = self.build_matrix()
        # ns = det(A) * inv(A)^T   (scales normals under the affine map)
        ns = jnp.linalg.det(affine) * jnp.linalg.inv(affine).T
        mean = src_centers.mean(axis=0)
        ut = mean + self.translation
        src_nrm_sc = (ns @ src_normals.T).T
        src_cnt_tf = (affine @ (src_centers - mean).T).T + ut
        return src_nrm_sc, src_cnt_tf

    def forward(self, src_normals, src_centers):
        src_nrm_sc, src_cnt_tf = self._transform(src_normals, src_centers)
        # Fused e_ss - 2*e_st pass: B = [S | T] with target normals already
        # scaled by -2 (linearity of the currents inner product).
        a = _merge_a(src_nrm_sc, src_cnt_tf)
        b = jnp.concatenate([_merge_b(src_nrm_sc, src_cnt_tf, 1.0),
                             self._tar_b_scaled], axis=1)
        e_cross = _merged_pair_energy(a, b, self.sigma, self.dim)
        return e_cross + self.e_tar_tar

    def forward_ref(self, src_normals, src_centers):
        src_nrm_sc, src_cnt_tf = self._transform(src_normals, src_centers)
        e_ss = _ref_pair_energy(src_nrm_sc, src_cnt_tf, src_nrm_sc, src_cnt_tf, self.sigma)
        e_st = _ref_pair_energy(src_nrm_sc, src_cnt_tf, self.tar_normals, self.tar_centers, self.sigma)
        e_tt = _ref_pair_energy(self.tar_normals, self.tar_centers,
                                self.tar_normals, self.tar_centers, self.sigma)
        return e_ss - 2.0 * e_st + e_tt


if __name__ == "__main__":
    key = jax.random.PRNGKey(0)
    k1, k2, k3, k4 = jax.random.split(key, 4)

    D = 2
    N_SRC = 200   # non-multiple of 8/128 to exercise padding
    N_TAR = 176
    SIGMA = 0.5

    tar_normals = jax.random.normal(k1, (N_TAR, D), dtype=jnp.float32) * 0.1
    tar_centers = jax.random.normal(k2, (N_TAR, D), dtype=jnp.float32)
    src_normals = jax.random.normal(k3, (N_SRC, D), dtype=jnp.float32) * 0.1
    src_centers = jax.random.normal(k4, (N_SRC, D), dtype=jnp.float32) + 0.25

    model = SingleAngleCurrentsJax(
        tar_normals, tar_centers, sigma=SIGMA,
        init_angle=0.3, init_translation=jnp.array([0.1, -0.2], jnp.float32),
        kernel='cauchy')

    energy = model.forward(src_normals, src_centers)
    energy = jax.block_until_ready(energy)

    energy_ref = jax.block_until_ready(model.forward_ref(src_normals, src_centers))
    np.testing.assert_allclose(np.asarray(energy), np.asarray(energy_ref),
                               rtol=5e-3, atol=5e-3)

    print("KERNEL_OK")
</pallas_src>

<mosaic_0001>
module attributes {stable_mosaic.version = 11 : i64} {
  func.func @_energy_kernel(%arg0: i32, %arg1: i32, %arg2: memref<88x4xf32, #tpu.memory_space<vmem>>, %arg3: memref<4x256xf32, #tpu.memory_space<vmem>>, %arg4: memref<1x8x128xf32, #tpu.memory_space<vmem>>) attributes {dimension_semantics = [#tpu.dimension_semantics<parallel>, #tpu.dimension_semantics<arbitrary>], iteration_bounds = array<i64: 2, 1>, scalar_prefetch = 0 : i64, scratch_operands = 0 : i64, tpu.core_type = #tpu.core_type<tc>, window_params = [{transform_indices = @transform_0, window_bounds = array<i64: 88, 4>}, {transform_indices = @transform_1, window_bounds = array<i64: 4, 256>}, {transform_indices = @transform_2, window_bounds = array<i64: 1, 8, 128>}]} {
    %c0_i32 = arith.constant 0 : i32
    %0 = arith.cmpi eq, %arg1, %c0_i32 : i32
    %1 = arith.extui %0 : i1 to i32
    %c0_i32_0 = arith.constant 0 : i32
    %2 = arith.cmpi ne, %1, %c0_i32_0 : i32
    scf.if %2 {
      %cst_8 = arith.constant 0.000000e+00 : f32
      %12 = vector.broadcast %cst_8 : f32 to vector<8x128xf32>
      %c0_9 = arith.constant 0 : index
      %c0_10 = arith.constant 0 : index
      %c0_11 = arith.constant 0 : index
      %13 = vector.load %arg4[%c0_9, %c0_10, %c0_11] : memref<1x8x128xf32, #tpu.memory_space<vmem>>, vector<1x8x128xf32>
      %14 = vector.shape_cast %13 : vector<1x8x128xf32> to vector<8x128xf32>
      %15 = vector.shape_cast %12 : vector<8x128xf32> to vector<1x8x128xf32>
      tpu.vector_store %arg4[%c0_9, %c0_10, %c0_11], %15 {strides = array<i32>} : memref<1x8x128xf32, #tpu.memory_space<vmem>>, vector<1x8x128xf32>,
    } else {
    }
    %cst = arith.constant 0.000000e+00 : f32
    %3 = vector.broadcast %cst : f32 to vector<8x128xf32>
    %c0_i32_1 = arith.constant 0 : i32
    %c11_i32 = arith.constant 11 : i32
    %4 = arith.addi %c0_i32_1, %c11_i32 : i32
    %c1_i32 = arith.constant 1 : i32
    %5 = scf.for %arg5 = %c0_i32_1 to %4 step %c1_i32 iter_args(%arg6 = %3) -> (vector<8x128xf32>)  : i32 {
      %c8_i32 = arith.constant 8 : i32
      %12 = arith.muli %arg5, %c8_i32 : i32
      %13 = tpu.assume_multiple %12, 8 : i32
      %14 = arith.index_cast %13 : i32 to index
      %c0_8 = arith.constant 0 : index
      %15 = vector.load %arg2[%14, %c0_8] : memref<88x4xf32, #tpu.memory_space<vmem>>, vector<8x4xf32>
      %16 = vector.extract_strided_slice %15 {offsets = [0, 0], sizes = [8, 1], strides = [1, 1]} : vector<8x4xf32> to vector<8x1xf32>
      %17 = vector.shape_cast %16 : vector<8x1xf32> to vector<8x1xf32>
      %18 = vector.broadcast %17 : vector<8x1xf32> to vector<8x128xf32>
      %19 = vector.extract_strided_slice %15 {offsets = [0, 1], sizes = [8, 1], strides = [1, 1]} : vector<8x4xf32> to vector<8x1xf32>
      %20 = vector.shape_cast %19 : vector<8x1xf32> to vector<8x1xf32>
      %21 = vector.broadcast %20 : vector<8x1xf32> to vector<8x128xf32>
      %22 = vector.extract_strided_slice %15 {offsets = [0, 2], sizes = [8, 1], strides = [1, 1]} : vector<8x4xf32> to vector<8x1xf32>
      %23 = vector.shape_cast %22 : vector<8x1xf32> to vector<8x1xf32>
      %24 = vector.broadcast %23 : vector<8x1xf32> to vector<8x128xf32>
      %25 = vector.extract_strided_slice %15 {offsets = [0, 3], sizes = [8, 1], strides = [1, 1]} : vector<8x4xf32> to vector<8x1xf32>
      %26 = vector.shape_cast %25 : vector<8x1xf32> to vector<8x1xf32>
      %27 = vector.broadcast %26 : vector<8x1xf32> to vector<8x128xf32>
      %c0_9 = arith.constant 0 : index
      %c0_10 = arith.constant 0 : index
      %28 = vector.load %arg3[%c0_9, %c0_10] : memref<4x256xf32, #tpu.memory_space<vmem>>, vector<4x128xf32>
      %cst_11 = arith.constant 0.000000e+00 : f32
      %29 = vector.broadcast %cst_11 : f32 to vector<8x128xf32>
      %cst_12 = arith.constant 0.000000e+00 : f32
      %30 = vector.broadcast %cst_12 : f32 to vector<8x128xf32>
      %31 = vector.extract_strided_slice %28 {offsets = [2, 0], sizes = [1, 128], strides = [1, 1]} : vector<4x128xf32> to vector<1x128xf32>
      %32 = vector.broadcast %31 : vector<1x128xf32> to vector<8x128xf32>
      %33 = arith.subf %24, %32 : vector<8x128xf32>
      %34 = arith.mulf %33, %33 : vector<8x128xf32>
      %35 = arith.addf %29, %34 : vector<8x128xf32>
      %36 = vector.extract_strided_slice %28 {offsets = [0, 0], sizes = [1, 128], strides = [1, 1]} : vector<4x128xf32> to vector<1x128xf32>
      %37 = vector.broadcast %36 : vector<1x128xf32> to vector<8x128xf32>
      %38 = arith.mulf %18, %37 : vector<8x128xf32>
      %39 = arith.addf %30, %38 : vector<8x128xf32>
      %40 = vector.extract_strided_slice %28 {offsets = [3, 0], sizes = [1, 128], strides = [1, 1]} : vector<4x128xf32> to vector<1x128xf32>
      %41 = vector.broadcast %40 : vector<1x128xf32> to vector<8x128xf32>
      %42 = arith.subf %27, %41 : vector<8x128xf32>
      %43 = arith.mulf %42, %42 : vector<8x128xf32>
      %44 = arith.addf %35, %43 : vector<8x128xf32>
      %45 = vector.extract_strided_slice %28 {offsets = [1, 0], sizes = [1, 128], strides = [1, 1]} : vector<4x128xf32> to vector<1x128xf32>
      %46 = vector.broadcast %45 : vector<1x128xf32> to vector<8x128xf32>
      %47 = arith.mulf %21, %46 : vector<8x128xf32>
      %48 = arith.addf %39, %47 : vector<8x128xf32>
      %cst_13 = arith.constant 4.000000e+00 : f32
      %49 = vector.broadcast %cst_13 : f32 to vector<8x128xf32>
      %50 = arith.mulf %44, %49 : vector<8x128xf32>
      %cst_14 = arith.constant 1.000000e+00 : f32
      %51 = vector.broadcast %cst_14 : f32 to vector<8x128xf32>
      %52 = arith.addf %51, %50 : vector<8x128xf32>
      %53 = tpu.reciprocal %52 {approx = true} : vector<8x128xf32> -> vector<8x128xf32>
      %54 = arith.mulf %53, %48 : vector<8x128xf32>
      %55 = arith.addf %arg6, %54 : vector<8x128xf32>
      %c0_15 = arith.constant 0 : index
      %c128 = arith.constant 128 : index
      %56 = vector.load %arg3[%c0_15, %c128] : memref<4x256xf32, #tpu.memory_space<vmem>>, vector<4x128xf32>
      %cst_16 = arith.constant 0.000000e+00 : f32
      %57 = vector.broadcast %cst_16 : f32 to vector<8x128xf32>
      %cst_17 = arith.constant 0.000000e+00 : f32
      %58 = vector.broadcast %cst_17 : f32 to vector<8x128xf32>
      %59 = vector.extract_strided_slice %56 {offsets = [2, 0], sizes = [1, 128], strides = [1, 1]} : vector<4x128xf32> to vector<1x128xf32>
      %60 = vector.broadcast %59 : vector<1x128xf32> to vector<8x128xf32>
      %61 = arith.subf %24, %60 : vector<8x128xf32>
      %62 = arith.mulf %61, %61 : vector<8x128xf32>
      %63 = arith.addf %57, %62 : vector<8x128xf32>
      %64 = vector.extract_strided_slice %56 {offsets = [0, 0], sizes = [1, 128], strides = [1, 1]} : vector<4x128xf32> to vector<1x128xf32>
      %65 = vector.broadcast %64 : vector<1x128xf32> to vector<8x128xf32>
      %66 = arith.mulf %18, %65 : vector<8x128xf32>
      %67 = arith.addf %58, %66 : vector<8x128xf32>
      %68 = vector.extract_strided_slice %56 {offsets = [3, 0], sizes = [1, 128], strides = [1, 1]} : vector<4x128xf32> to vector<1x128xf32>
      %69 = vector.broadcast %68 : vector<1x128xf32> to vector<8x128xf32>
      %70 = arith.subf %27, %69 : vector<8x128xf32>
      %71 = arith.mulf %70, %70 : vector<8x128xf32>
      %72 = arith.addf %63, %71 : vector<8x128xf32>
      %73 = vector.extract_strided_slice %56 {offsets = [1, 0], sizes = [1, 128], strides = [1, 1]} : vector<4x128xf32> to vector<1x128xf32>
      %74 = vector.broadcast %73 : vector<1x128xf32> to vector<8x128xf32>
      %75 = arith.mulf %21, %74 : vector<8x128xf32>
      %76 = arith.addf %67, %75 : vector<8x128xf32>
      %cst_18 = arith.constant 4.000000e+00 : f32
      %77 = vector.broadcast %cst_18 : f32 to vector<8x128xf32>
      %78 = arith.mulf %72, %77 : vector<8x128xf32>
      %cst_19 = arith.constant 1.000000e+00 : f32
      %79 = vector.broadcast %cst_19 : f32 to vector<8x128xf32>
      %80 = arith.addf %79, %78 : vector<8x128xf32>
      %81 = tpu.reciprocal %80 {approx = true} : vector<8x128xf32> -> vector<8x128xf32>
      %82 = arith.mulf %81, %76 : vector<8x128xf32>
      %83 = arith.addf %55, %82 : vector<8x128xf32>
      scf.yield %83 : vector<8x128xf32>
    }
    %c11_i32_2 = arith.constant 11 : i32
    %c0 = arith.constant 0 : index
    %c0_3 = arith.constant 0 : index
    %c0_4 = arith.constant 0 : index
    %6 = vector.load %arg4[%c0, %c0_3, %c0_4] : memref<1x8x128xf32, #tpu.memory_space<vmem>>, vector<1x8x128xf32>
    %7 = vector.shape_cast %6 : vector<1x8x128xf32> to vector<8x128xf32>
    %8 = arith.addf %7, %5 : vector<8x128xf32>
    %c0_5 = arith.constant 0 : index
    %c0_6 = arith.constant 0 : index
    %c0_7 = arith.constant 0 : index
    %9 = vector.load %arg4[%c0_5, %c0_6, %c0_7] : memref<1x8x128xf32, #tpu.memory_space<vmem>>, vector<1x8x128xf32>
    %10 = vector.shape_cast %9 : vector<1x8x128xf32> to vector<8x128xf32>
    %11 = vector.shape_cast %8 : vector<8x128xf32> to vector<1x8x128xf32>
    tpu.vector_store %arg4[%c0_5, %c0_6, %c0_7], %11 {strides = array<i32>} : memref<1x8x128xf32, #tpu.memory_space<vmem>>, vector<1x8x128xf32>,
    return
  }
  func.func @transform_0(%arg0: i32, %arg1: i32) -> (i32, i32) {
    %c0_i32 = arith.constant 0 : i32
    %c0_i32_0 = arith.constant 0 : i32
    return %arg0, %c0_i32 : i32, i32
  }
  func.func @transform_1(%arg0: i32, %arg1: i32) -> (i32, i32) {
    %c0_i32 = arith.constant 0 : i32
    %c0_i32_0 = arith.constant 0 : i32
    return %c0_i32, %arg1 : i32, i32
  }
  func.func @transform_2(%arg0: i32, %arg1: i32) -> (i32, i32, i32) {
    %c0_i32 = arith.constant 0 : i32
    %c0_i32_0 = arith.constant 0 : i32
    %c0_i32_1 = arith.constant 0 : i32
    return %arg0, %c0_i32, %c0_i32_0 : i32, i32, i32
  }
}

</mosaic_0001>

<bundles_post_ra>
// kernel: tpu_custom_call.1
= control target key start
LH: loop header
LB: loop body
LE: loop exit
PB: predicated region body
PF: predicated region fallthrough
CT: control target
= control target key end

     0   :  { %7 = vsyncpa [#allocation3], 0  ;;  %s703_s0 = inlined_call_operand.vmem [shape: f32[176,4], index: 0, kind: input, shape index: {}]   ;;  %s704_s1 = inlined_call_operand.vmem [shape: f32[4,256], index: 1, kind: input, shape index: {}]   ;;  %s705_s2 = inlined_call_operand.hbm [shape: f32[2,8,128], index: 2, kind: output, shape index: {}]  }
   0x1   :  { %9 = vsyncpa [#allocation3 + $0x1], 0  ;;  %s574_s9 = smov 0   ;;  %s576_s10 = smov 0  }
   0x2   :  { %s578_s11 = smov 0   ;;  %s580_s12 = smov 0  }
   0x3   :  { %s582_s13 = smov 0   ;;  %s584_s14 = smov 0  }
   0x4 LB: > { %s361_s15 = sadd.s32 4294967295, %s544_s14   ;;  %s362_s16 = sadd.s32 4294967294, %s544_s14   ;;  %s544_s14 = sphi %s584_s14, %s15_s14   ;;  %s540_s13 = sphi %s582_s13, %s713_s13   ;;  %s536_s12 = sphi %s580_s12, %s712_s12   ;;  %s532_s11 = sphi %s578_s11, %s711_s11   ;;  %s528_s10 = sphi %s576_s10, %s710_s10   ;;  %s524_s9 = sphi %s574_s9, %s709_s9  }
   0x5   : > { %s27_s17 = sadd.s32 1, %s540_s13  ;;  %s86_s18 = sadd.s32 1, %s532_s11 }
   0x6   : > { %p29_p0 = scmp.ge.s32.totalorder %s27_s17, 2  ;;  %p96_p1 = scmp.ne.s32.totalorder %s532_s11, %s528_s10 }
   0x7   : > { %p97_p2 = scmp.eq.s32.totalorder %s361_s15, 1  ;;  %p102_p3 = scmp.ne.s32.totalorder %s528_s10, %s524_s9 }
   0x8   : > { %s715_s17 = smov (%p29_p0, %s27_s17), 0  ;;  %p103_p5 = scmp.eq.s32.totalorder %s362_s16, 1 }
   0x9   : > { %p614_p4 = por %p97_p2, %p96_p1  ;;  %s83_s20 = ssub.s32 %s540_s13, %s715_s17 }
   0xa   : > { %p366_p6 = scmp.ge.s32.totalorder %s544_s14, 1  ;;  %p84_p7 = scmp.eq.s32.totalorder %s83_s20, 0 }
   0xb   : > { %p621_p8 = por %p103_p5, %p102_p3  ;;  %p139_p9 = scmp.lt.s32.totalorder %s544_s14, 3 }
   0xc   : > { %s627_s22 = scalar_select %p84_p7, %s532_s11, %s86_s18  }
   0xd   : > { %p140_p10 = pnand %p366_p6, %p139_p9 }
   0xe   : > { %s163_s23 = sand.u32 (!%p140_p10), 1, %s528_s10   ;;  %s166_s24 = smul.u32 (!%p140_p10), 11, %s536_s12 }
   0xf   : > { %143 = sbr.rel (%p140_p10) target bundleno = 178 (0xb2), region = 28  ;;  %s367_s25 = sshll.u32 (!%p140_p10), %s163_s23, 3 }
  0x10   : > { %p167_p11 = scmp.lt.s32.totalorder (!%p140_p10), %s166_s24, 21  ;;  %s633_s26 = scalar_lea.vmem (!%p140_p10), [#allocation2], %s367_s25 }
  0x11   : > { %s643_s3 = smov (!%p140_p10), 0  }
  0x14   : > { %v554_v0 = vmov 0.0   ;;  %s717_s24 = smov (!%p167_p11, %s166_s24), 21  ;;  %v641_v1 = vmov 0.0  }
  0x15   : > { %182 = vst [vmem:[%s633_s26] sm:$0xff] %v554_v0  ;;  %s368_s27 = sshll.u32 %s717_s24, 3 }
  0x16   : > { %s639_s30 = scalar_lea.vmem %s703_s0, %s368_s27 }
  0x17 LB: >> { %v555_v2 = vmov 2   ;;  %v556_v3 = vmov 0   ;;  %s369_s4 = sshll.u32 %s552_s3, 3  ;;  %v557_v5 = vmov 3   ;;  %v558_v6 = vmov 1   ;;  %s188_s3 = sadd.s32 1, %s552_s3   ;;  %s552_s3 = sphi %s643_s3, %s188_s3   ;;  %v548_v1 = vphi %v641_v1, %v708_v1  }
  0x18   : >> { %450 = vset.pattern.permute.xlu0 %v555_v2  ;;  %452 = vset.pattern.permute.xlu1 %v556_v3  ;;  %s191_s5 = scalar_lea.vmem %s639_s30, %s369_s4  ;;  %v210_v8 = vld [vmem:[%s704_s1] sm:$0xf]  ;;  %v230_v9 = vld [vmem:[%s704_s1 + $0x4] sm:$0xf]  ;;  %p185_p12 = scmp.ge.s32.totalorder %s188_s3, 11  }
  0x19   : >> { %v192_v4 = vld [vmem:[%s191_s5] sm:$0xff]  ;;  %v211_v10 = vperm.slane %v210_v8, 2  ;;  %v231_v11 = vperm.slane %v230_v9, 2  ;;  %v218_v12 = vperm.slane %v210_v8, 3  ;;  %v238_v13 = vperm.slane %v230_v9, 3  ;;  %s371_s16 = sshll.u32 (%p185_p12), %s536_s12, 3 }
  0x1a   : >> { %203 = vperm.xlu0 %450, %v192_v4   ;;  %195 = vperm.xlu1 %452, %v192_v4   ;;  %v215_v28 = vperm.slane %v210_v8, 0  ;;  %v222_v29 = vperm.slane %v210_v8, 1  ;;  %v235_v33 = vperm.slane %v230_v9, 0  ;;  %v242_v34 = vperm.slane %v230_v9, 1  ;;  %s264_s24 = scalar_lea.hbm (%p185_p12), %s705_s2, %s371_s16  ;;  %s266_s25 = sshll.u32 (%p185_p12), %s633_s26, 4  ;;  %s267_s25 = int_to_ptr.vmem [resolvable:$true] %s266_s25 }
  0x1b   : > { %s268_s27 = sshll.u32 (%p185_p12), %s264_s24, 4  ;;  %s254_s28 = scalar_lea.sflag (%p185_p12), [#allocation3], %s163_s23  ;;  %s269_s27 = int_to_ptr.hbm [resolvable:$true] %s268_s27 }
  0x1c   : > { %v250_v47 = vld [vmem:[%s633_s26] sm:$0xff] (%p185_p12)  ;;  %s472_s29 = sshra.s32 (%p185_p12), %s269_s27, 4  ;;  %s478_s4 = scalar_lea.hbm (%p185_p12), %s705_s2, 16  ;;  %s473_s29 = int_to_ptr.hbm [resolvable:$true] %s472_s29 }
  0x1d   : > { %s474_s30 = scalar_lea.hbm (%p185_p12), %s473_s29, 8  ;;  %p479_p2 = scmp.lt.s32.totalorder (%p185_p12), %s473_s29, %s705_s2 }
  0x1e   : > { %p475_p13 = scmp.ne.s32.totalorder (%p185_p12), %s473_s29, %s474_s30  ;;  %p480_p3 = scmp.lt.s32.totalorder (%p185_p12), %s478_s4, %s474_s30 }
  0x20   : > { %p476_p0 = pnand (%p185_p12), %p475_p13, %p614_p4  ;;  %p481_p5 = por (%p185_p12), %p480_p3, %p479_p2 }
  0x22   : >> { %451 = vset.pattern.permute.xlu0 %v557_v5  ;;  %453 = vset.pattern.permute.xlu1 %v558_v6  ;;  %p477_p1 = pneg (%p185_p12), %p476_p0 }
  0x23   : >> { %207 = vperm.xlu0 %451, %v192_v4   ;;  %199 = vperm.xlu1 %453, %v192_v4  }
  0x24   : > { %p482_p6 = pnand (%p185_p12), %p481_p5, %p477_p1 }
  0x8c   : >> { %v204_v7 = vpop.permute.xlu0 %203  ;;  %v196_v16 = vpop.permute.xlu1 %195 }
  0x8d   : >> { %v212_v14 = vsub.f32 %v204_v7, %v211_v10  ;;  %v232_v15 = vsub.f32 %v204_v7, %v231_v11  ;;  %v216_v35 = vmul.f32 %v215_v28, %v196_v16  ;;  %v236_v37 = vmul.f32 %v235_v33, %v196_v16 }
  0x8f   : >> { %v213_v20 = vmul.f32 %v212_v14, %v212_v14  ;;  %v233_v21 = vmul.f32 %v232_v15, %v232_v15 }
  0x95   : >> { %v208_v17 = vpop.permute.xlu0 %207  ;;  %v200_v32 = vpop.permute.xlu1 %199 }
  0x96   : >> { %v219_v18 = vsub.f32 %v208_v17, %v218_v12  ;;  %v239_v19 = vsub.f32 %v208_v17, %v238_v13  ;;  %v223_v36 = vmul.f32 %v222_v29, %v200_v32  ;;  %v243_v38 = vmul.f32 %v242_v34, %v200_v32 }
  0x98   : >> { %v220_v22 = vmul.f32 %v219_v18, %v219_v18  ;;  %v240_v23 = vmul.f32 %v239_v19, %v239_v19  ;;  %v224_v39 = vadd.f32 %v223_v36, %v216_v35  ;;  %v244_v43 = vadd.f32 %v243_v38, %v236_v37 }
  0x9a   : >> { %v221_v24 = vadd.f32 %v220_v22, %v213_v20  ;;  %v241_v25 = vadd.f32 %v240_v23, %v233_v21 }
  0x9c   : >> { %v225_v26 = vmul.f32 4.0, %v221_v24  ;;  %v245_v27 = vmul.f32 4.0, %v241_v25 }
  0x9e   : >> { %v226_v30 = vadd.f32 1.0, %v225_v26  ;;  %v246_v31 = vadd.f32 1.0, %v245_v27 }
  0xa0   : >> { %454 = vrcp.f32 %v226_v30 }
  0xa1   : >> { %456 = vrcp.f32 %v246_v31 }
  0xa6   : >> { %v455_v40 = vpop.eup %454 }
  0xa7   : >> { %v457_v41 = vpop.eup %456  ;;  %v228_v42 = vmul.f32 %v455_v40, %v224_v39 }
  0xa8   : >> { %v248_v45 = vmul.f32 %v457_v41, %v244_v43 }
  0xa9   : >> { %v229_v44 = vadd.f32 %v548_v1, %v228_v42  ;;  %187 = sbr.rel (!%p185_p12) target bundleno = 23 (0x17), region = 78 }
  0xab   : >> { %v249_v46 = vadd.f32 %v248_v45, %v229_v44  }
  0xad   : >> { %v708_v1 = vmov %v249_v46  ;;  %v251_v48 = vadd.f32 (%p185_p12), %v250_v47, %v249_v46 }
  0xaf   : > { %252 = vst [vmem:[%s633_s26] sm:$0xff] %v251_v48 }
  0xb0   : > { %485 = shalt.err (!%p482_p6)
}
  0xb1   : > { %374 = dma.vmem_to_hbm [thread:$0]  (%p614_p4), %s267_s25, 128, %s269_s27, %s254_s28  }
  0xb2 PF: > { %p380_p7 = scmp.ge.s32.totalorder %s544_s14, 2  ;;  %s280_s23 = sand.u32 1, %s524_s9  }
  0xb3   : > { %s281_s26 = scalar_lea.sflag [#allocation3], %s280_s23 }
  0xb4   : > { %p377_p9 = pnand %p380_p7, %p621_p8 }
  0xb6   : > { %p378_p10 = pneg %p377_p9 }
  0xb8   : > { %519 = dma.done.wait (%p378_p10), %s281_s26, 128  }
  0xb9   : > { %521 = vsyncadd (%p378_p10), %s281_s26, 4294967168  ;;  %s15_s14 = sadd.s32 1, %s544_s14   ;;  %s709_s9 = smov %s528_s10 }
  0xba   : > { %p12_p11 = scmp.ge.s32.totalorder %s15_s14, 4   ;;  %s710_s10 = smov %s532_s11 }
  0xbb   : > { %s711_s11 = smov %s627_s22  ;;  %s712_s12 = smov %s540_s13 }
  0xbc   : > { %s713_s13 = smov %s715_s17  ;;  %14 = sbr.rel (!%p12_p11) target bundleno = 4 (0x4), region = 89 }
  0xc1   :  { %287 = vsyncpa [#allocation3], 1 }
  0xc2   :  { %289 = vsyncpa [#allocation3 + $0x1], 1 }

</bundles_post_ra>
